<compile_context>
chip_gen: v6e
topology: v6e:2x2x1
jax: 0.10.0
libtpu: 0.0.40
codegen_flags: <defaults>
</compile_context>

<pallas_src>
import functools

import jax
import jax.numpy as jnp
from jax.experimental import pallas as pl
from jax.experimental.pallas import tpu as pltpu

NUM_REGIONS = 10  # the reference loops `for i in range(10)` over mask values


# ---------------------------------------------------------------------------
# Kernel 1 (fused): 3x3 conv as a single im2col matmul + per-region channel sums.
#   patches_ref: (1, 9*Cin, T)    channel-major im2col patches (T spatial lanes)
#   w_ref:       (Cinter, 9*Cin)  conv weight (transposed for channel-major out)
#   b_ref:       (Cinter, 1)      bias
#   mask_ref:    (1, 1, T)        int32 region ids 0..9
#   inter_ref:   (1, Cinter, T)   conv output, channel-major            [out]
#   sums_ref:    (1, Cinter, 10)  per-region channel sums (revisited
#                                 across the spatial-tile grid axis)    [out]
# ---------------------------------------------------------------------------
def conv_sums_kernel(patches_ref, w_ref, b_ref, mask_ref, inter_ref, sums_ref):
    t = pl.program_id(1)

    # conv: (Cinter, 9Cin) @ (9Cin, T) -> (Cinter, T), one MXU push.
    inter = jnp.dot(w_ref[...], patches_ref[0],
                    preferred_element_type=jnp.float32) + b_ref[...]
    inter_ref[0] = inter

    # one-hot region indicator (10, T) via integer compare.
    m = mask_ref[0]                                                # (1, T) int32
    onehot = (jax.lax.broadcasted_iota(jnp.int32, (NUM_REGIONS, m.shape[1]), 0)
              == m).astype(jnp.float32)                            # (10, T)

    # sums[c, i] = sum_p inter[c, p] * onehot[i, p]  -> A @ B^T on the MXU.
    partial = jax.lax.dot_general(
        inter, onehot, (((1,), (1,)), ((), ())),
        preferred_element_type=jnp.float32)                        # (Cinter, 10)

    @pl.when(t == 0)
    def _init():
        sums_ref[...] = jnp.zeros_like(sums_ref)

    sums_ref[0] += partial


# ---------------------------------------------------------------------------
# Kernel 2: masked per-region channel selection as ONE matmul.
#   inter_ref: (1, Cinter, T)        mask_ref: (1, 1, T) int32
#   sel_ref:   (1, K, 10*Cinter)     flattened one-hot channel selector
#   out_ref:   (1, K, T)
#   out[k, p] = sum_{i,c} sel[k, i*C+c] * (mask[p]==i) * inter[c, p]
# ---------------------------------------------------------------------------
def select_kernel(inter_ref, mask_ref, sel_ref, out_ref):
    inter = inter_ref[0]                                           # (C, T)
    C, T = inter.shape
    m = mask_ref[0]                                                # (1, T)
    onehot = (jax.lax.broadcasted_iota(jnp.int32, (NUM_REGIONS, T), 0)
              == m).astype(jnp.float32)                            # (10, T)
    # masked stack: stack[(i, c), p] = onehot[i, p] * inter[c, p].
    # (C is a multiple of 8, so collapsing (10, C) into the sublane dim is free.)
    stack = (onehot[:, None, :] * inter[None, :, :]).reshape(NUM_REGIONS * C, T)
    # (K, 10*C) @ (10*C, T): contraction >= 128 -> a single well-filled matmul.
    out_ref[0] = jnp.dot(sel_ref[0], stack, preferred_element_type=jnp.float32)


# ---------------------------------------------------------------------------
# Wrapper (glue: im2col, mask downsample, tiny top-K sort, one-hot selector).
# ---------------------------------------------------------------------------
def _pick_spatial_tile(hw):
    """Largest 'nice' lane-multiple tile dividing HW (prefers >= 2 tiles)."""
    if hw % 128 != 0:
        return hw                       # fall back: whole image as one tile
    for cand in (2048, 1024, 512, 256, 128):
        if cand < hw and hw % cand == 0:
            return cand
    return hw


@functools.partial(jax.jit, static_argnames=("output_channel",))
def rgfs_conv_forward(x_nchw, mask_nchw, weight_hwio, bias, output_channel):
    B, Cin, H, W = x_nchw.shape
    Cinter = weight_hwio.shape[-1]
    K = output_channel
    HW = H * W
    T = _pick_spatial_tile(HW)
    n_t = HW // T

    # channel-major im2col: patches[b, (kh*3+kw)*Cin + c, h*W+w] = xpad[b,c,h+kh,w+kw]
    x = x_nchw.astype(jnp.float32)
    xpad = jnp.pad(x, ((0, 0), (0, 0), (1, 1), (1, 1)))
    cols = [xpad[:, :, kh:kh + H, kw:kw + W].reshape(B, Cin, HW)
            for kh in range(3) for kw in range(3)]
    patches = jnp.concatenate(cols, axis=1)                        # (B, 9*Cin, HW)

    w_t = weight_hwio.astype(jnp.float32).reshape(9 * Cin, Cinter).T   # (Cinter, 9Cin)
    b2 = bias.astype(jnp.float32).reshape(Cinter, 1)

    # nearest-neighbor downsample (scale_factor=0.25) + integer region ids.
    mask_i = mask_nchw[:, 0, ::4, ::4].astype(jnp.int32).reshape(B, 1, HW)

    # (1) fused conv + per-region channel sums
    inter_t, sums_t = pl.pallas_call(
        conv_sums_kernel,
        grid=(B, n_t),
        in_specs=[
            pl.BlockSpec((1, 9 * Cin, T), lambda b, t: (b, 0, t)),
            pl.BlockSpec((Cinter, 9 * Cin), lambda b, t: (0, 0)),
            pl.BlockSpec((Cinter, 1), lambda b, t: (0, 0)),
            pl.BlockSpec((1, 1, T), lambda b, t: (b, 0, t)),
        ],
        out_specs=(
            pl.BlockSpec((1, Cinter, T), lambda b, t: (b, 0, t)),
            pl.BlockSpec((1, Cinter, NUM_REGIONS), lambda b, t: (b, 0, 0)),
        ),
        out_shape=(
            jax.ShapeDtypeStruct((B, Cinter, HW), jnp.float32),
            jax.ShapeDtypeStruct((B, Cinter, NUM_REGIONS), jnp.float32),
        ),
        compiler_params=pltpu.CompilerParams(
            dimension_semantics=("parallel", "arbitrary"),
            vmem_limit_bytes=32 * 1024 * 1024),
    )(patches, w_t, b2, mask_i)

    # (2) tiny (B, Cinter, 10) top-K channel selection in plain JAX.
    # TODO(synk): lax.sort has no Mosaic lowering; this tiny sort stays outside
    # the kernels. torch.sort is unstable on ties, jnp.argsort is stable, so
    # outputs can differ from PyTorch only when channel sums tie exactly.
    order = jnp.argsort(-sums_t, axis=1)                           # (B, Cinter, 10)
    e = jnp.sort(order[:, :K, :], axis=1)                          # (B, K, 10)
    sel = jax.nn.one_hot(e, Cinter, dtype=jnp.float32)             # (B, K, 10, Cinter)
    sel = sel.reshape(B, K, NUM_REGIONS * Cinter)                  # matches stack order

    # (3) masked gather (one-hot matmul) accumulated over regions, lane-dense out.
    y_t = pl.pallas_call(
        select_kernel,
        grid=(B, n_t),
        in_specs=[
            pl.BlockSpec((1, Cinter, T), lambda b, t: (b, 0, t)),
            pl.BlockSpec((1, 1, T), lambda b, t: (b, 0, t)),
            pl.BlockSpec((1, K, NUM_REGIONS * Cinter), lambda b, t: (b, 0, 0)),
        ],
        out_specs=pl.BlockSpec((1, K, T), lambda b, t: (b, 0, t)),
        out_shape=jax.ShapeDtypeStruct((B, K, HW), jnp.float32),
        compiler_params=pltpu.CompilerParams(
            dimension_semantics=("parallel", "parallel"),
            vmem_limit_bytes=32 * 1024 * 1024),
    )(inter_t, mask_i, sel)

    return y_t.reshape(B, K, H, W)                                 # NCHW, no transpose


if __name__ == "__main__":
    # Small, forward-consistent shapes:
    #   x: (B=2, Cin=4, H=16, W=16); mask: (B, 1, 4H, 4W) with values 0..9
    #   RGFSConv(input_channel=4, output_channel=8, ratio=2.0, padding=1)
    #   -> C_inter = int(8 * 2.0) = 16, output y: (B, 8, 16, 16)
    B, Cin, H, W = 2, 4, 16, 16
    output_channel, ratio = 8, 2.0
    Cinter = int(output_channel * ratio)

    key = jax.random.PRNGKey(0)
    k_w, k_b, k_x, k_m = jax.random.split(key, 4)
    weight = jax.random.normal(k_w, (3, 3, Cin, Cinter), jnp.float32) * 0.1
    bias = jax.random.normal(k_b, (Cinter,), jnp.float32) * 0.1
    x = jax.random.normal(k_x, (B, Cin, H, W), jnp.float32)
    mask = jax.random.randint(k_m, (B, 1, 4 * H, 4 * W), 0, NUM_REGIONS
                              ).astype(jnp.float32)

    y = rgfs_conv_forward(x, mask, weight, bias, output_channel=output_channel)
    y = jax.block_until_ready(y)
    assert y.shape == (B, output_channel, H, W), y.shape
    print("KERNEL_OK")
</pallas_src>

<mosaic_0001>
module attributes {stable_mosaic.version = 11 : i64} {
  func.func @conv_sums_kernel(%arg0: i32, %arg1: i32, %arg2: memref<1x36x128xf32, #tpu.memory_space<vmem>>, %arg3: memref<16x36xf32, #tpu.memory_space<vmem>>, %arg4: memref<16x1xf32, #tpu.memory_space<vmem>>, %arg5: memref<1x1x128xi32, #tpu.memory_space<vmem>>, %arg6: memref<1x16x128xf32, #tpu.memory_space<vmem>>, %arg7: memref<1x16x10xf32, #tpu.memory_space<vmem>>) attributes {dimension_semantics = [#tpu.dimension_semantics<parallel>, #tpu.dimension_semantics<arbitrary>], iteration_bounds = array<i64: 2, 2>, scalar_prefetch = 0 : i64, scratch_operands = 0 : i64, tpu.core_type = #tpu.core_type<tc>, window_params = [{transform_indices = @transform_0, window_bounds = array<i64: 1, 36, 128>}, {pipeline_mode = #tpu.pipeline_mode<synchronous>, transform_indices = @transform_1, window_bounds = array<i64: 16, 36>}, {pipeline_mode = #tpu.pipeline_mode<synchronous>, transform_indices = @transform_2, window_bounds = array<i64: 16, 1>}, {transform_indices = @transform_3, window_bounds = array<i64: 1, 1, 128>}, {transform_indices = @transform_4, window_bounds = array<i64: 1, 16, 128>}, {transform_indices = @transform_5, window_bounds = array<i64: 1, 16, 10>}]} {
    %c0 = arith.constant 0 : index
    %c0_0 = arith.constant 0 : index
    %0 = vector.load %arg3[%c0, %c0_0] : memref<16x36xf32, #tpu.memory_space<vmem>>, vector<16x36xf32>
    %c0_1 = arith.constant 0 : index
    %c0_2 = arith.constant 0 : index
    %c0_3 = arith.constant 0 : index
    %1 = vector.load %arg2[%c0_1, %c0_2, %c0_3] : memref<1x36x128xf32, #tpu.memory_space<vmem>>, vector<1x36x128xf32>
    %2 = vector.shape_cast %1 : vector<1x36x128xf32> to vector<36x128xf32>
    %cst = arith.constant dense<0.000000e+00> : vector<16x128xf32>
    %3 = tpu.matmul %0, %2, %cst {dimension_numbers = #tpu.dot_dimension_numbers<[1], [0], [0], [1], [0, 0, 1, 1], [], []>} : vector<16x36xf32>, vector<36x128xf32>, vector<16x128xf32> -> vector<16x128xf32>
    %c0_4 = arith.constant 0 : index
    %c0_5 = arith.constant 0 : index
    %4 = vector.load %arg4[%c0_4, %c0_5] : memref<16x1xf32, #tpu.memory_space<vmem>>, vector<16x1xf32>
    %5 = vector.broadcast %4 : vector<16x1xf32> to vector<16x128xf32>
    %6 = arith.addf %3, %5 : vector<16x128xf32>
    %c0_6 = arith.constant 0 : index
    %c0_7 = arith.constant 0 : index
    %c0_8 = arith.constant 0 : index
    %7 = vector.load %arg6[%c0_6, %c0_7, %c0_8] : memref<1x16x128xf32, #tpu.memory_space<vmem>>, vector<1x16x128xf32>
    %8 = vector.shape_cast %7 : vector<1x16x128xf32> to vector<16x128xf32>
    %9 = vector.shape_cast %6 : vector<16x128xf32> to vector<1x16x128xf32>
    tpu.vector_store %arg6[%c0_6, %c0_7, %c0_8], %9 {strides = array<i32>} : memref<1x16x128xf32, #tpu.memory_space<vmem>>, vector<1x16x128xf32>,
    %c0_9 = arith.constant 0 : index
    %c0_10 = arith.constant 0 : index
    %c0_11 = arith.constant 0 : index
    %10 = vector.load %arg5[%c0_9, %c0_10, %c0_11] : memref<1x1x128xi32, #tpu.memory_space<vmem>>, vector<1x1x128xi32>
    %11 = vector.shape_cast %10 : vector<1x1x128xi32> to vector<1x128xi32>
    %12 = tpu.iota {dimensions = array<i32: 0>} : vector<10x128xi32>
    %13 = vector.broadcast %11 : vector<1x128xi32> to vector<10x128xi32>
    %14 = arith.cmpi eq, %12, %13 : vector<10x128xi32>
    %15 = arith.extui %14 : vector<10x128xi1> to vector<10x128xi32>
    %16 = arith.sitofp %15 : vector<10x128xi32> to vector<10x128xf32>
    %cst_12 = arith.constant dense<0.000000e+00> : vector<16x10xf32>
    %17 = tpu.matmul %6, %16, %cst_12 {dimension_numbers = #tpu.dot_dimension_numbers<[1], [1], [0], [0], [0, 0, 1, 0], [], []>} : vector<16x128xf32>, vector<10x128xf32>, vector<16x10xf32> -> vector<16x10xf32>
    %c0_i32 = arith.constant 0 : i32
    %18 = arith.cmpi eq, %arg1, %c0_i32 : i32
    %19 = arith.extui %18 : i1 to i32
    %c0_i32_13 = arith.constant 0 : i32
    %20 = arith.cmpi ne, %19, %c0_i32_13 : i32
    scf.if %20 {
      %cst_20 = arith.constant 0.000000e+00 : f32
      %27 = vector.broadcast %cst_20 : f32 to vector<1x16x10xf32>
      %c0_21 = arith.constant 0 : index
      %c0_22 = arith.constant 0 : index
      %c0_23 = arith.constant 0 : index
      %28 = vector.load %arg7[%c0_21, %c0_22, %c0_23] : memref<1x16x10xf32, #tpu.memory_space<vmem>>, vector<1x16x10xf32>
      tpu.vector_store %arg7[%c0_21, %c0_22, %c0_23], %27 {strides = array<i32>} : memref<1x16x10xf32, #tpu.memory_space<vmem>>, vector<1x16x10xf32>,
    } else {
    }
    %c0_14 = arith.constant 0 : index
    %c0_15 = arith.constant 0 : index
    %c0_16 = arith.constant 0 : index
    %21 = vector.load %arg7[%c0_14, %c0_15, %c0_16] : memref<1x16x10xf32, #tpu.memory_space<vmem>>, vector<1x16x10xf32>
    %22 = vector.shape_cast %21 : vector<1x16x10xf32> to vector<16x10xf32>
    %23 = arith.addf %22, %17 : vector<16x10xf32>
    %c0_17 = arith.constant 0 : index
    %c0_18 = arith.constant 0 : index
    %c0_19 = arith.constant 0 : index
    %24 = vector.load %arg7[%c0_17, %c0_18, %c0_19] : memref<1x16x10xf32, #tpu.memory_space<vmem>>, vector<1x16x10xf32>
    %25 = vector.shape_cast %24 : vector<1x16x10xf32> to vector<16x10xf32>
    %26 = vector.shape_cast %23 : vector<16x10xf32> to vector<1x16x10xf32>
    tpu.vector_store %arg7[%c0_17, %c0_18, %c0_19], %26 {strides = array<i32>} : memref<1x16x10xf32, #tpu.memory_space<vmem>>, vector<1x16x10xf32>,
    return
  }
  func.func @transform_0(%arg0: i32, %arg1: i32) -> (i32, i32, i32) {
    %c0_i32 = arith.constant 0 : i32
    %c0_i32_0 = arith.constant 0 : i32
    return %arg0, %c0_i32, %arg1 : i32, i32, i32
  }
  func.func @transform_1(%arg0: i32, %arg1: i32) -> (i32, i32) {
    %c0_i32 = arith.constant 0 : i32
    %c0_i32_0 = arith.constant 0 : i32
    %c0_i32_1 = arith.constant 0 : i32
    return %c0_i32, %c0_i32_0 : i32, i32
  }
  func.func @transform_2(%arg0: i32, %arg1: i32) -> (i32, i32) {
    %c0_i32 = arith.constant 0 : i32
    %c0_i32_0 = arith.constant 0 : i32
    %c0_i32_1 = arith.constant 0 : i32
    return %c0_i32, %c0_i32_0 : i32, i32
  }
  func.func @transform_3(%arg0: i32, %arg1: i32) -> (i32, i32, i32) {
    %c0_i32 = arith.constant 0 : i32
    %c0_i32_0 = arith.constant 0 : i32
    return %arg0, %c0_i32, %arg1 : i32, i32, i32
  }
  func.func @transform_4(%arg0: i32, %arg1: i32) -> (i32, i32, i32) {
    %c0_i32 = arith.constant 0 : i32
    %c0_i32_0 = arith.constant 0 : i32
    return %arg0, %c0_i32, %arg1 : i32, i32, i32
  }
  func.func @transform_5(%arg0: i32, %arg1: i32) -> (i32, i32, i32) {
    %c0_i32 = arith.constant 0 : i32
    %c0_i32_0 = arith.constant 0 : i32
    %c0_i32_1 = arith.constant 0 : i32
    return %arg0, %c0_i32, %c0_i32_0 : i32, i32, i32
  }
}

module attributes {stable_mosaic.version = 11 : i64} {
  func.func @select_kernel(%arg0: i32, %arg1: i32, %arg2: memref<1x16x128xf32, #tpu.memory_space<vmem>>, %arg3: memref<1x1x128xi32, #tpu.memory_space<vmem>>, %arg4: memref<1x8x160xf32, #tpu.memory_space<vmem>>, %arg5: memref<1x8x128xf32, #tpu.memory_space<vmem>>) attributes {dimension_semantics = [#tpu.dimension_semantics<parallel>, #tpu.dimension_semantics<parallel>], iteration_bounds = array<i64: 2, 2>, scalar_prefetch = 0 : i64, scratch_operands = 0 : i64, tpu.core_type = #tpu.core_type<tc>, window_params = [{transform_indices = @transform_0, window_bounds = array<i64: 1, 16, 128>}, {transform_indices = @transform_1, window_bounds = array<i64: 1, 1, 128>}, {transform_indices = @transform_2, window_bounds = array<i64: 1, 8, 160>}, {transform_indices = @transform_3, window_bounds = array<i64: 1, 8, 128>}]} {
    %c0 = arith.constant 0 : index
    %c0_0 = arith.constant 0 : index
    %c0_1 = arith.constant 0 : index
    %0 = vector.load %arg2[%c0, %c0_0, %c0_1] : memref<1x16x128xf32, #tpu.memory_space<vmem>>, vector<1x16x128xf32>
    %1 = vector.shape_cast %0 : vector<1x16x128xf32> to vector<16x128xf32>
    %c0_2 = arith.constant 0 : index
    %c0_3 = arith.constant 0 : index
    %c0_4 = arith.constant 0 : index
    %2 = vector.load %arg3[%c0_2, %c0_3, %c0_4] : memref<1x1x128xi32, #tpu.memory_space<vmem>>, vector<1x1x128xi32>
    %3 = vector.shape_cast %2 : vector<1x1x128xi32> to vector<1x128xi32>
    %4 = tpu.iota {dimensions = array<i32: 0>} : vector<10x128xi32>
    %5 = vector.broadcast %3 : vector<1x128xi32> to vector<10x128xi32>
    %6 = arith.cmpi eq, %4, %5 : vector<10x128xi32>
    %7 = arith.extui %6 : vector<10x128xi1> to vector<10x128xi32>
    %8 = arith.sitofp %7 : vector<10x128xi32> to vector<10x128xf32>
    %9 = vector.shape_cast %8 : vector<10x128xf32> to vector<10x1x128xf32>
    %10 = vector.shape_cast %1 : vector<16x128xf32> to vector<1x16x128xf32>
    %11 = vector.broadcast %9 : vector<10x1x128xf32> to vector<10x16x128xf32>
    %12 = vector.broadcast %10 : vector<1x16x128xf32> to vector<10x16x128xf32>
    %13 = arith.mulf %11, %12 : vector<10x16x128xf32>
    %14 = vector.shape_cast %13 : vector<10x16x128xf32> to vector<160x128xf32>
    %c0_5 = arith.constant 0 : index
    %c0_6 = arith.constant 0 : index
    %c0_7 = arith.constant 0 : index
    %15 = vector.load %arg4[%c0_5, %c0_6, %c0_7] : memref<1x8x160xf32, #tpu.memory_space<vmem>>, vector<1x8x160xf32>
    %16 = vector.shape_cast %15 : vector<1x8x160xf32> to vector<8x160xf32>
    %cst = arith.constant dense<0.000000e+00> : vector<8x128xf32>
    %17 = tpu.matmul %16, %14, %cst {dimension_numbers = #tpu.dot_dimension_numbers<[1], [0], [0], [1], [0, 0, 1, 1], [], []>} : vector<8x160xf32>, vector<160x128xf32>, vector<8x128xf32> -> vector<8x128xf32>
    %c0_8 = arith.constant 0 : index
    %c0_9 = arith.constant 0 : index
    %c0_10 = arith.constant 0 : index
    %18 = vector.load %arg5[%c0_8, %c0_9, %c0_10] : memref<1x8x128xf32, #tpu.memory_space<vmem>>, vector<1x8x128xf32>
    %19 = vector.shape_cast %18 : vector<1x8x128xf32> to vector<8x128xf32>
    %20 = vector.shape_cast %17 : vector<8x128xf32> to vector<1x8x128xf32>
    tpu.vector_store %arg5[%c0_8, %c0_9, %c0_10], %20 {strides = array<i32>} : memref<1x8x128xf32, #tpu.memory_space<vmem>>, vector<1x8x128xf32>,
    return
  }
  func.func @transform_0(%arg0: i32, %arg1: i32) -> (i32, i32, i32) {
    %c0_i32 = arith.constant 0 : i32
    %c0_i32_0 = arith.constant 0 : i32
    return %arg0, %c0_i32, %arg1 : i32, i32, i32
  }
  func.func @transform_1(%arg0: i32, %arg1: i32) -> (i32, i32, i32) {
    %c0_i32 = arith.constant 0 : i32
    %c0_i32_0 = arith.constant 0 : i32
    return %arg0, %c0_i32, %arg1 : i32, i32, i32
  }
  func.func @transform_2(%arg0: i32, %arg1: i32) -> (i32, i32, i32) {
    %c0_i32 = arith.constant 0 : i32
    %c0_i32_0 = arith.constant 0 : i32
    %c0_i32_1 = arith.constant 0 : i32
    return %arg0, %c0_i32, %c0_i32_0 : i32, i32, i32
  }
  func.func @transform_3(%arg0: i32, %arg1: i32) -> (i32, i32, i32) {
    %c0_i32 = arith.constant 0 : i32
    %c0_i32_0 = arith.constant 0 : i32
    return %arg0, %c0_i32, %arg1 : i32, i32, i32
  }
}

</mosaic_0001>

<bundles_post_ra>
// kernel: neg.1
= control target key start
LH: loop header
LB: loop body
LE: loop exit
PB: predicated region body
PF: predicated region fallthrough
CT: control target
= control target key end

     0   :  { %s72_s0 = inlined_call_operand.vmem [shape: f32[2,16,10], index: 0, kind: input, shape index: {}]   ;;  %s73_s1 = inlined_call_operand.vmem [shape: f32[2,16,10], index: 1, kind: output, shape index: {}]  }
   0x1   :  { %v2_v0 = vld [vmem:[%s72_s0] sm:$0xff]  ;;  %v32_v1 = vld [vmem:[%s72_s0 + $0x10] sm:$0xff]  ;;  %v34_v2 = vld [vmem:[%s72_s0 + $0x8] sm:$0xff] }
   0x2   :  { %v5_v3 = vxor.u32 2147483648, %v2_v0  ;;  %v12_v4 = vxor.u32 2147483648, %v32_v1  ;;  %v20_v5 = vxor.u32 2147483648, %v34_v2  ;;  %v36_v6 = vld [vmem:[%s72_s0 + $0x18] sm:$0xff] }
   0x3   :  { %v28_v7 = vxor.u32 2147483648, %v36_v6 }
   0x4   :  { %7 = vst [vmem:[%s73_s1] sm:$0xff] %v5_v3  ;;  %33 = vst [vmem:[%s73_s1 + $0x10] sm:$0xff] %v12_v4 }
   0x5   :  { %35 = vst [vmem:[%s73_s1 + $0x8] sm:$0xff] %v20_v5  ;;  %37 = vst [vmem:[%s73_s1 + $0x18] sm:$0xff] %v28_v7 }

// kernel: rgfs_conv_forward.3
= control target key start
LH: loop header
LB: loop body
LE: loop exit
PB: predicated region body
PF: predicated region fallthrough
CT: control target
= control target key end

     0   :  { %s790_s12 = smov 0   ;;  %s792_s13 = smov 0   ;;  %s964_s0 = inlined_call_operand.vmem [shape: f32[2,16,256], index: 0, kind: input, shape index: {}]   ;;  %s965_s1 = inlined_call_operand.vmem [shape: s32[2,1,256], index: 1, kind: input, shape index: {}]   ;;  %s966_s2 = inlined_call_operand.vmem [shape: f32[2,8,160], index: 2, kind: input, shape index: {}]   ;;  %s967_s3 = inlined_call_operand.vmem [shape: f32[2,8,256], index: 3, kind: output, shape index: {}]  }
   0x1   :  { %s794_s14 = smov 0   ;;  %s796_s15 = smov 0  }
   0x2   :  { %s798_s16 = smov 0   ;;  %s800_s17 = smov 0  }
   0x3   :  { %s802_s18 = smov 0  }
   0x4 LB: > { %s22_s19 = sadd.s32 1, %s758_s16  ;;  %s25_s20 = sadd.s32 1, %s762_s17  ;;  %s766_s18 = sphi %s802_s18, %s13_s18   ;;  %s762_s17 = sphi %s800_s17, %s973_s17   ;;  %s758_s16 = sphi %s798_s16, %s972_s16   ;;  %s754_s15 = sphi %s796_s15, %s971_s15   ;;  %s750_s14 = sphi %s794_s14, %s970_s14   ;;  %s746_s13 = sphi %s792_s13, %s969_s13   ;;  %s742_s12 = sphi %s790_s12, %s968_s12  }
   0x5   : > { %p23_p0 = scmp.ge.s32.totalorder %s22_s19, 2  ;;  %p41_p1 = scmp.ne.s32.totalorder %s746_s13, %s742_s12 }
   0x6   : > { %p42_p2 = scmp.eq.s32.totalorder %s766_s18, 0  ;;  %s34_s24 = sadd.s32 1, %s746_s13 }
   0x7   : > { %s975_s19 = smov (%p23_p0, %s22_s19), 0  ;;  %s977_s20 = smov (!%p23_p0, %s25_s20), %s762_s17 }
   0x8   : > { %p43_p3 = por %p42_p2, %p41_p1  ;;  %p27_p4 = scmp.ge.s32.totalorder %s977_s20, 2 }
   0x9   : > { %s30_s21 = ssub.s32 %s758_s16, %s975_s19  ;;  %p636_p6 = scmp.ge.s32.totalorder %s766_s18, 4 }
   0xa   : > { %s979_s20 = smov (%p27_p4, %s977_s20), 0 }
   0xb   : > { %s29_s22 = ssub.s32 %s762_s17, %s979_s20  ;;  %149 = sbr.rel (%p636_p6) target bundleno = 23 (0x17), region = 16 }
   0xc   : > { %s31_s23 = sor.u32 %s30_s21, %s29_s22 }
   0xd   : > { %p32_p5 = scmp.eq.s32.totalorder %s31_s23, 0 }
   0xf   : > { %s841_s25 = scalar_select %p32_p5, %s746_s13, %s34_s24  }
  0x10   : > { %152 = sbr.rel (!%p43_p3) target bundleno = 23 (0x17), region = 20  ;;  %s154_s26 = sand.u32 (%p43_p3), 1, %s746_s13  }
  0x11   : > { %s638_s27 = sshll.u32 (%p43_p3), %s762_s17, 2  ;;  %s637_s28 = sshll.u32 (%p43_p3), %s154_s26, 4 }
  0x12   : > { %s158_s29 = sadd.s32 (%p43_p3), %s758_s16, %s638_s27  ;;  %s156_s7 = scalar_lea.vmem (%p43_p3), [#allocation2], %s637_s28 }
  0x13   : > { %s639_s30 = sshll.u32 (%p43_p3), %s158_s29, 3 }
  0x14   : > { %s160_s6 = scalar_lea.vmem (%p43_p3), %s964_s0, %s639_s30 }
  0x15   : > { %v191_v0 = vld [vmem:[%s160_s6] sm:$0xff]  ;;  %v193_v1 = vld [vmem:[%s160_s6 + $0x10] sm:$0xff] }
  0x16   : > { %192 = vst [vmem:[%s156_s7] sm:$0xff] %v191_v0  ;;  %194 = vst [vmem:[%s156_s7 + $0x8] sm:$0xff] %v193_v1 }
  0x17 PF: > { %p640_p7 = scmp.ge.s32.totalorder %s766_s18, 1  ;;  %p217_p8 = scmp.lt.s32.totalorder %s766_s18, 5 }
  0x19   : > { %p218_p9 = pnand %p640_p7, %p217_p8 }
  0x1a   : > { %p262_p10 = scmp.lt.s32.totalorder (!%p218_p9), %s754_s15, 1  ;;  %p264_p11 = scmp.lt.s32.totalorder (!%p218_p9), %s750_s14, 1 }
  0x1b   : > { %221 = sbr.rel (%p218_p9) target bundleno = 287 (0x11f), region = 66 }
  0x20   : > { %v768_v2 = vmov 0.0   ;;  %v285_v3 = vlaneseq  ;;  %v769_v4 = vmov 1966171168   ;;  %s981_s15 = smov (!%p262_p10, %s754_s15), 1  ;;  %s983_s14 = smov (!%p264_p11, %s750_s14), 1  ;;  %vm443_vm0 = vcmask 261120  }
  0x21   : > { %447 = vmatprep.subr.mxu0 %v768_v2  ;;  %v302_v5 = vunpack.c.l.s4 %v769_v4  ;;  %s642_s8 = sshll.u32 %s981_s15, 1  ;;  %s653_s9 = sshll.u32 %s981_s15, 4 }
  0x22   : > { %v286_v6 = vshrl.u32 %v285_v3, 7  ;;  %s857_s10 = sadd.s32 %s642_s8, %s983_s14  ;;  %s862_s22 = scalar_lea.vmem %s966_s2, %s653_s9 }
  0x23   : > { %v303_v7 = vunpack.c.0.s8 %v302_v5  ;;  %s268_s26 = scalar_lea.vmem %s965_s1, %s857_s10  ;;  %v442_v8 = vld [vmem:[%s862_s22 + $0x8] sm:$0xff]  ;;  %s224_s14 = sand.u32 1, %s742_s12   ;;  %v441_v0 = vld [vmem:[%s862_s22] sm:$0xff] }
  0x24   : > { %v647_v9 = vld [vmem:[%s268_s26] ss:$0 sm:$0xff]  ;;  %650 = vmatprep.mubr.msk.f32.mxu0 %vm443_vm0, %v442_v8  ;;  %s641_s15 = sshll.u32 %s224_s14, 4  ;;  %v876_v17 = vsub.s32 0, %v286_v6  ;;  %v287_v32 = vadd.s32 8, %v286_v6  ;;  %s646_s12 = sshll.u32 %s857_s10, 3 }
  0x25   : > { %vm292_vm1 = vcmp.eq.s32.totalorder %v286_v6, %v647_v9  ;;  %v869_v10 = vsub.s32 %v303_v7, %v286_v6  ;;  %s226_s27 = scalar_lea.vmem [#allocation2], %s641_s15  ;;  %s281_s30 = scalar_lea.vmem %s967_s3, %s646_s12 }
  0x26   : > { %v648_v11 = vsel %vm292_vm1, 1.0, %v768_v2  ;;  %v879_v21 = vld [vmem:[%s226_s27] sm:$0xff]  ;;  %v881_v22 = vld [vmem:[%s226_s27 + $0x8] sm:$0xff]  ;;  %vm293_vm2 = vcmp.eq.s32.totalorder %v287_v32, %v647_v9 }
  0x27   : > { %v300_v12 = vcombine.high %v648_v11, %v648_v11  ;;  %v307_v19 = vrot.slane %v648_v11, %v869_v10  ;;  %v649_v41 = vsel %vm293_vm2, 1.0, %v768_v2 }
  0x28   : > { %v355_v45 = vrot.slane %v649_v41, %v869_v10 }
  0x29   : > { %v314_v13 = vrot.slane %v300_v12, %v869_v10  ;;  %v315_v25 = vcombine.high %v307_v19, %v307_v19  ;;  %v323_v36 = vrot.slane %v307_v19, %v869_v10 }
  0x2a   : > { %v356_v49 = vcombine.high %v355_v45, %v355_v45  ;;  %v363_v57 = vrot.slane %v355_v45, %v869_v10 }
  0x2b   : > { %v316_v14 = vcombine.high %v314_v13, %v314_v13  ;;  %v330_v15 = vrot.slane %v314_v13, %v869_v10  ;;  %v337_v30 = vrot.slane %v315_v25, %v869_v10  ;;  %v345_v40 = vcombine.high %v323_v36, %v323_v36 }
  0x2c   : > { %v374_v52 = vrot.slane %v323_v36, %v876_v17  ;;  %v370_v53 = vrot.slane %v356_v49, %v869_v10  ;;  %v406_v60 = vrot.slane %v363_v57, %v876_v17 }
  0x2d   : > { %v344_v16 = vrot.slane %v316_v14, %v869_v10  ;;  %v346_v18 = vcombine.high %v330_v15, %v330_v15  ;;  %v390_v34 = vrot.slane %v330_v15, %v876_v17  ;;  %v347_v35 = vcombine.high %v337_v30, %v337_v30 }
  0x2e   : > { %v382_v44 = vrot.slane %v345_v40, %v876_v17  ;;  %v378_v48 = vrot.slane %v337_v30, %v876_v17  ;;  %v422_v55 = vmul.f32 %v374_v52, %v881_v22  ;;  %v410_v56 = vrot.slane %v370_v53, %v876_v17 }
  0x2f   : > { %v348_v20 = vcombine.high %v344_v16, %v344_v16  ;;  %v398_v24 = vrot.slane %v346_v18, %v876_v17  ;;  %v394_v29 = vrot.slane %v344_v16, %v876_v17  ;;  %v430_v38 = vmul.f32 %v390_v34, %v881_v22 }
  0x30   : > { %v386_v39 = vrot.slane %v347_v35, %v876_v17  ;;  %v429_v42 = vmul.f32 %v390_v34, %v879_v21  ;;  %v426_v47 = vmul.f32 %v382_v44, %v881_v22  ;;  %v425_v50 = vmul.f32 %v382_v44, %v879_v21 }
  0x31   : > { %v402_v23 = vrot.slane %v348_v20, %v876_v17  ;;  %v434_v28 = vmul.f32 %v398_v24, %v881_v22  ;;  %v433_v31 = vmul.f32 %v398_v24, %v879_v21  ;;  %v432_v33 = vmul.f32 %v394_v29, %v881_v22 }
  0x32   : > { %v431_v37 = vmul.f32 %v394_v29, %v879_v21  ;;  %v428_v43 = vmul.f32 %v386_v39, %v881_v22  ;;  %v427_v46 = vmul.f32 %v386_v39, %v879_v21  ;;  %v424_v51 = vmul.f32 %v378_v48, %v881_v22 }
  0x33   : > { %v436_v26 = vmul.f32 %v402_v23, %v881_v22  ;;  %v435_v27 = vmul.f32 %v402_v23, %v879_v21  ;;  %v423_v54 = vmul.f32 %v378_v48, %v879_v21  ;;  %v421_v58 = vmul.f32 %v374_v52, %v879_v21 }
  0x34   : > { %v440_v59 = vmul.f32 %v410_v56, %v881_v22  ;;  %v439_v61 = vmul.f32 %v410_v56, %v879_v21  ;;  %v438_v62 = vmul.f32 %v406_v60, %v881_v22  ;;  %v437_v63 = vmul.f32 %v406_v60, %v879_v21 }
  0x35   : > { %448 = vmatpush1.msra.mxu0 %v436_v26 }
  0x36   : > { %449 = vmatprep.subr.mxu0 %v768_v2 }
  0x37   : > { %450 = vmatpush1.msra.mxu0 %v435_v27 }
  0x38   : > { %451 = vmatprep.subr.mxu0 %v768_v2 }
  0x39   : > { %452 = vmatpush1.msra.mxu0 %v434_v28 }
  0x3a   : > { %453 = vmatprep.subr.mxu0 %v768_v2 }
  0x3b   : > { %454 = vmatpush1.msra.mxu0 %v433_v31 }
  0x3c   : > { %455 = vmatprep.subr.mxu0 %v768_v2 }
  0x3d   : > { %456 = vmatpush1.msra.mxu0 %v432_v33 }
  0x3e   : > { %457 = vmatprep.subr.mxu0 %v768_v2 }
  0x3f   : > { %458 = vmatpush1.msra.mxu0 %v431_v37 }
  0x40   : > { %459 = vmatprep.subr.mxu0 %v768_v2 }
  0x41   : > { %460 = vmatpush1.msra.mxu0 %v430_v38 }
  0x42   : > { %461 = vmatprep.subr.mxu0 %v768_v2 }
  0x43   : > { %462 = vmatpush1.msra.mxu0 %v429_v42 }
  0x44   : > { %463 = vmatprep.subr.mxu0 %v768_v2 }
  0x45   : > { %464 = vmatpush1.msra.mxu0 %v428_v43 }
  0x46   : > { %465 = vmatprep.subr.mxu0 %v768_v2 }
  0x47   : > { %466 = vmatpush1.msra.mxu0 %v427_v46 }
  0x48   : > { %467 = vmatprep.subr.mxu0 %v768_v2 }
  0x49   : > { %468 = vmatpush1.msra.mxu0 %v426_v47 }
  0x4a   : > { %469 = vmatprep.subr.mxu0 %v768_v2 }
  0x4b   : > { %470 = vmatpush1.msra.mxu0 %v425_v50 }
  0x4c   : > { %471 = vmatprep.subr.mxu0 %v768_v2 }
  0x4d   : > { %472 = vmatpush1.msra.mxu0 %v424_v51 }
  0x4e   : > { %473 = vmatprep.subr.mxu0 %v768_v2 }
  0x4f   : > { %474 = vmatpush1.msra.mxu0 %v423_v54 }
  0x50   : > { %475 = vmatprep.subr.mxu0 %v768_v2 }
  0x51   : > { %476 = vmatpush1.msra.mxu0 %v422_v55 }
  0x52   : > { %477 = vmatprep.subr.mxu0 %v768_v2 }
  0x53   : > { %478 = vmatpush1.msra.mxu0 %v421_v58 }
  0x54   : > { %503 = vmatprep.subr.mxu0 %v768_v2 }
  0x55   : > { %504 = vmatpush2.msra.mxu0 %v440_v59 }
  0x56   : > { %505 = vmatprep.subr.mxu0 %v768_v2 }
  0x57   : > { %506 = vmatpush2.msra.mxu0 %v439_v61 }
  0x58   : > { %507 = vmatprep.subr.mxu0 %v768_v2 }
  0x59   : > { %508 = vmatpush2.msra.mxu0 %v438_v62 }
  0x5a   : > { %509 = vmatprep.subr.mxu0 %v768_v2 }
  0x5b   : > { %510 = vmatpush2.msra.mxu0 %v437_v63 }
  0x5c   : > { %512 = vmatmul.mubr.f32.vlgmr.msra.gmra.mxu0 %v441_v0 }
 0x11c   : > { %v513_v1 = vpop.f32.mrf.mxu0 }
 0x11d   : > { %517 = vst [vmem:[%s281_s30] sm:$0xff] %v513_v1 }
 0x11e   : > { %v515_v3 = vpop.f32.mrf.mxu0 }
 0x11f PF: > { %s13_s18 = sadd.s32 1, %s766_s18   ;;  %s968_s12 = smov %s746_s13 }
 0x120   : > { %p10_p12 = scmp.ge.s32.totalorder %s13_s18, 6   ;;  %s969_s13 = smov %s841_s25 }
 0x121   : > { %s970_s14 = smov %s758_s16  ;;  %s971_s15 = smov %s762_s17 }
 0x122   : > { %s972_s16 = smov %s975_s19  ;;  %s973_s17 = smov %s979_s20 }
 0x123   :  { %12 = sbr.rel (!%p10_p12) target bundleno = 4 (0x4), region = 111 }

// kernel: rgfs_conv_forward.2
= control target key start
LH: loop header
LB: loop body
LE: loop exit
PB: predicated region body
PF: predicated region fallthrough
CT: control target
= control target key end

     0   :  { %s915_s18 = smov 0   ;;  %s917_s19 = smov 0   ;;  %s1048_s0 = inlined_call_operand.vmem [shape: f32[2,36,256], index: 0, kind: input, shape index: {}]   ;;  %s1049_s1 = inlined_call_operand.vmem [shape: f32[16,36], index: 1, kind: input, shape index: {}]   ;;  %s1050_s2 = inlined_call_operand.vmem [shape: f32[16,1], index: 2, kind: input, shape index: {}]   ;;  %s1051_s3 = inlined_call_operand.vmem [shape: s32[2,1,256], index: 3, kind: input, shape index: {}]   ;;  %s1052_s4 = inlined_call_operand.vmem [shape: f32[2,16,256], index: 4, kind: output, shape index: {0}]   ;;  %s1053_s5 = inlined_call_operand.vmem [shape: f32[2,16,10], index: 5, kind: output, shape index: {1}]  }
   0x1   :  { %s919_s20 = smov 0   ;;  %s921_s21 = smov 0  }
   0x2   :  { %s923_s22 = smov 0   ;;  %s925_s23 = smov 0  }
   0x3   :  { %s927_s24 = smov 0  }
   0x4 LB: > { %s25_s25 = sadd.s32 1, %s872_s22  ;;  %s28_s26 = sadd.s32 1, %s876_s23  ;;  %s880_s24 = sphi %s927_s24, %s16_s24   ;;  %s876_s23 = sphi %s925_s23, %s1060_s23   ;;  %s872_s22 = sphi %s923_s22, %s1059_s22   ;;  %s868_s21 = sphi %s921_s21, %s1058_s21   ;;  %s864_s20 = sphi %s919_s20, %s1057_s20   ;;  %s860_s19 = sphi %s917_s19, %s1056_s19   ;;  %s856_s18 = sphi %s915_s18, %s1055_s18  }
   0x5   : > { %p26_p0 = scmp.ge.s32.totalorder %s25_s25, 2  ;;  %s707_s27 = sadd.s32 4294967295, %s880_s24  }
   0x6   : > { %p44_p1 = scmp.ne.s32.totalorder %s860_s19, %s856_s18  ;;  %p45_p2 = scmp.eq.s32.totalorder %s880_s24, 0 }
   0x7   : > { %s1062_s25 = smov (%p26_p0, %s25_s25), 0  ;;  %s1064_s26 = smov (!%p26_p0, %s28_s26), %s876_s23 }
   0x8   : > { %p30_p3 = scmp.ge.s32.totalorder %s1064_s26, 2  ;;  %p146_p4 = scmp.eq.s32.totalorder %s707_s27, 3 }
   0x9   : > { %s33_s28 = ssub.s32 %s872_s22, %s1062_s25  ;;  %p46_p5 = por %p45_p2, %p44_p1 }
   0xa   : > { %s1066_s26 = smov (%p30_p3, %s1064_s26), 0  ;;  %p963_p6 = por %p146_p4, %p44_p1 }
   0xb   : > { %s32_s30 = ssub.s32 %s876_s23, %s1066_s26  ;;  %s37_s7 = sadd.s32 1, %s860_s19 }
   0xc   : > { %s34_s6 = sor.u32 %s33_s28, %s32_s30  ;;  %p710_p8 = scmp.ge.s32.totalorder %s880_s24, 4 }
   0xd   : > { %p35_p7 = scmp.eq.s32.totalorder %s34_s6, 0 }
   0xe   : > { %200 = sbr.rel (%p710_p8) target bundleno = 29 (0x1d), region = 24 }
   0xf   : > { %s971_s8 = scalar_select %p35_p7, %s860_s19, %s37_s7  }
  0x13   : > { %203 = sbr.rel (!%p46_p5) target bundleno = 29 (0x1d), region = 28  ;;  %s205_s9 = sand.u32 (%p46_p5), 1, %s860_s19  }
  0x14   : > { %s764_s10 = smul.u32 (%p46_p5), 10, %s876_s23 }
  0x15   : > { %s763_s11 = smul.u32 (%p46_p5), 40, %s205_s9 }
  0x16   : > { %s209_s12 = sadd.s32 (%p46_p5), %s872_s22, %s764_s10 }
  0x17   : > { %s711_s13 = sshll.u32 (%p46_p5), %s209_s12, 3  ;;  %s207_s17 = scalar_lea.vmem (%p46_p5), [#allocation2], %s763_s11 }
  0x18   : > { %s211_s16 = scalar_lea.vmem %s1048_s0, %s711_s13 }
  0x19   : > { %v248_v0 = vld [vmem:[%s211_s16] sm:$0xff]  ;;  %v250_v1 = vld [vmem:[%s211_s16 + $0x10] sm:$0xff] }
  0x1a   : > { %v252_v2 = vld [vmem:[%s211_s16 + $0x20] sm:$0xff]  ;;  %249 = vst [vmem:[%s207_s17] sm:$0xff] %v248_v0  ;;  %251 = vst [vmem:[%s207_s17 + $0x8] sm:$0xff] %v250_v1  ;;  %v254_v3 = vld [vmem:[%s211_s16 + $0x30] sm:$0xff] }
  0x1b   : > { %253 = vst [vmem:[%s207_s17 + $0x10] sm:$0xff] %v252_v2  ;;  %v256_v4 = vld [vmem:[%s211_s16 + $0x40] sm:$0xff]  ;;  %255 = vst [vmem:[%s207_s17 + $0x18] sm:$0xff] %v254_v3 }
  0x1c   : > { %257 = vst [vmem:[%s207_s17 + $0x20] sm:$0xff] %v256_v4 }
  0x1d PF: > { %p712_p9 = scmp.ge.s32.totalorder %s880_s24, 1  ;;  %p272_p10 = scmp.lt.s32.totalorder %s880_s24, 5 }
  0x1f   : > { %p273_p11 = pnand %p712_p9, %p272_p10 }
  0x20   : > { %s279_s27 = sand.u32 (!%p273_p11), 1, %s856_s18   ;;  %p317_p12 = scmp.lt.s32.totalorder (!%p273_p11), %s868_s21, 1 }
  0x21   : > { %276 = sbr.rel (%p273_p11) target bundleno = 456 (0x1c8), region = 70  ;;  %p319_p13 = scmp.lt.s32.totalorder (!%p273_p11), %s864_s20, 1 }
  0x22   : > { %s765_s6 = smul.u32 (!%p273_p11), 40, %s279_s27  ;;  %p725_p0 = scmp.ne.s32.totalorder (!%p273_p11), %s864_s20, 0 }
  0x24   : > { %s281_s12 = scalar_lea.vmem (!%p273_p11), [#allocation2], %s765_s6 }
  0x26   : > { %v329_v5 = vld [vmem:[%s1049_s1] sm:$0xff]  ;;  %vm348_vm0 = vcmask 293888   ;;  %v437_v6 = vlaneseq  ;;  %v882_v7 = vmov 0   ;;  %vm355_vm1 = vcmask 1043456   ;;  %v337_v10 = vld [vmem:[%s1050_s2 + $0x8] sm:$0xff]  ;;  %s318_s13 = scalar_select %p317_p12, %s868_s21, 1 }
  0x27   : > { %753 = vmatprep.mubr.msk.f32.mxu0 %vm348_vm0, %v329_v5  ;;  %825 = vset.pattern.permute.xlu0 %v882_v7  ;;  %v336_v8 = vld [vmem:[%s1050_s2] sm:$0xff]  ;;  %s320_s14 = scalar_select %p319_p13, %s864_s20, 1  ;;  %v333_v13 = vld [vmem:[%s281_s12 + $0x10] sm:$0xff]  ;;  %v332_v15 = vld [vmem:[%s281_s12 + $0x8] sm:$0xff]  ;;  %v883_v18 = vmov 1.0  }
  0x28   : > { %340 = vperm.xlu0 %825, %v336_v8   ;;  %v438_v9 = vshrl.u32 %v437_v6, 7  ;;  %v335_v11 = vld [vmem:[%s281_s12 + $0x20] sm:$0xf]  ;;  %v334_v12 = vld [vmem:[%s281_s12 + $0x18] sm:$0xff]  ;;  %s714_s15 = sshll.u32 %s318_s13, 1  ;;  %s731_s16 = sshll.u32 %s318_s13, 4 }
  0x29   : > { %743 = vmatprep.subr.msk.mxu0 %vm355_vm1, %v335_v11  ;;  %s322_s17 = sadd.s32 %s714_s15, %s320_s14  ;;  %s1002_s7 = scalar_lea.vmem %s1053_s5, %s731_s16  ;;  %v331_v17 = vld [vmem:[%s281_s12] sm:$0xff] }
  0x2a   : > { %744 = vmatpush3.msk.msra.mxu0 %vm355_vm1, %v335_v11  ;;  %v439_v14 = vadd.s32 8, %v438_v9  ;;  %s323_s10 = scalar_lea.vmem %s1051_s3, %s322_s17  ;;  %v330_v19 = vld [vmem:[%s1049_s1 + $0x8] sm:$0xff]  ;;  %s713_s12 = sshll.u32 %s279_s27, 4 }
  0x2b   : > { %745 = vmatprep.subr.mxu0 %v334_v12  ;;  %v720_v16 = vld [vmem:[%s323_s10] ss:$0 sm:$0xff]  ;;  %s309_s14 = scalar_lea.vmem [#allocation3], %s713_s12 }
  0x2c   : > { %345 = vperm.xlu0 %825, %v337_v10   ;;  %746 = vmatpush3.msra.mxu0 %v334_v12  ;;  %vm444_vm2 = vcmp.eq.s32.totalorder %v438_v9, %v720_v16  ;;  %vm445_vm3 = vcmp.eq.s32.totalorder %v439_v14, %v720_v16 }
  0x2d   : > { %747 = vmatprep.subr.mxu0 %v333_v13  ;;  %756 = vmatprep.subr.msk.mxu1 %vm445_vm3, %v883_v18 }
  0x2e   : > { %748 = vmatpush3.msra.mxu0 %v333_v13  ;;  %757 = vmatpush3.xpose.msk.msra.mxu1 %vm445_vm3, %v883_v18 }
  0x2f   : > { %749 = vmatprep.subr.mxu0 %v332_v15  ;;  %758 = vmatprep.subr.msk.mxu1 %vm444_vm2, %v883_v18 }
  0x30   : > { %750 = vmatpush3.msra.mxu0 %v332_v15 }
  0x31   : > { %751 = vmatprep.subr.mxu0 %v331_v17 }
  0x32   : > { %752 = vmatpush3.msra.mxu0 %v331_v17  ;;  %759 = vmatpush3.xpose.msk.msra.mxu1 %vm444_vm2, %v883_v18 }
  0x33   : > { %754 = vmatmul.mubr.msk.f32.vlgmr.msra.gmra.mxu0 %vm348_vm0, %v330_v19 }
  0xa3   : > { %v341_v20 = vpop.permute.xlu0 %340 }
  0xa7   : > { %v346_v21 = vpop.permute.xlu0 %345 }
  0xf3   : > { %v755_v22 = vpop.f32.mrf.mxu0 }
  0xf4   : > { %v431_v23 = vadd.f32 %v755_v22, %v346_v21 }
  0xf5   : > { %v425_v24 = vpop.f32.mrf.mxu0 }
  0xf6   : > { %435 = vst [vmem:[%s309_s14 + $0x8] sm:$0xff] %v431_v23  ;;  %v426_v25 = vadd.f32 %v425_v24, %v341_v20 }
  0xf8   : > { %434 = vst [vmem:[%s309_s14] sm:$0xff] %v426_v25  ;;  %760 = vmatprep.mubr.f32.mxu1 %v426_v25 }
  0xf9   : > { %761 = vmatmul.mubr.f32.vlgmr.msra.gmra.mxu1 %v431_v23 }
 0x1b7   : > { %528 = sbr.rel (%p725_p0) target bundleno = 446 (0x1be), region = 78 }
 0x1b9   : > { %v762_v26 = vpop.f32.mrf.mxu1 }
 0x1bb   : > { %v516_v27 = vpop.f32.mrf.mxu1 }
 0x1bc   : > { %vm529_vm4 = vcmask 80896   ;;  %v884_v28 = vmov 0.0  }
 0x1bd   : > { %530 = vst.msk [vmem:[%s1002_s7] sm:$0xff] %vm529_vm4, %v884_v28  ;;  %531 = vst.msk [vmem:[%s1002_s7 + $0x8] sm:$0xff] %vm529_vm4, %v884_v28 }
 0x1be PF: > { %vm536_vm5 = vcmask 80896   ;;  %s727_s18 = sshll.u32 (%p963_p6), %s868_s21, 2  ;;  %v585_v33 = vld [vmem:[%s309_s14] sm:$0xff] (%p963_p6)  ;;  %v587_v34 = vld [vmem:[%s309_s14 + $0x8] sm:$0xff] (%p963_p6) }
 0x1bf   : > { %s552_s27 = sadd.s32 (%p963_p6), %s864_s20, %s727_s18 }
 0x1c0   : > { %s728_s15 = sshll.u32 (%p963_p6), %s552_s27, 3 }
 0x1c1   : > { %s554_s28 = scalar_lea.vmem (%p963_p6), %s1052_s4, %s728_s15 }
 0x1c2   : > { %586 = vst [vmem:[%s554_s28] sm:$0xff] (%p963_p6), %v585_v33  ;;  %588 = vst [vmem:[%s554_s28 + $0x10] sm:$0xff] (%p963_p6), %v587_v34 }
 0x1c3   : > { %550 = sbr.rel (!%p963_p6) target bundleno = 456 (0x1c8), region = 82 }
 0x1c4   : > { %v532_v29 = vld [vmem:[%s1002_s7] sm:$0xff]  ;;  %v533_v30 = vld [vmem:[%s1002_s7 + $0x8] sm:$0xff] }
 0x1c5   : > { %v534_v31 = vadd.f32 %v532_v29, %v516_v27  ;;  %v535_v32 = vadd.f32 %v762_v26, %v533_v30 }
 0x1c7   : > { %537 = vst.msk [vmem:[%s1002_s7] sm:$0xff] %vm536_vm5, %v534_v31  ;;  %538 = vst.msk [vmem:[%s1002_s7 + $0x8] sm:$0xff] %vm536_vm5, %v535_v32 }
 0x1c8 PF: > { %s16_s24 = sadd.s32 1, %s880_s24   ;;  %s1055_s18 = smov %s860_s19 }
 0x1c9   : > { %p13_p1 = scmp.ge.s32.totalorder %s16_s24, 6   ;;  %s1056_s19 = smov %s971_s8 }
 0x1ca   : > { %s1057_s20 = smov %s872_s22  ;;  %s1058_s21 = smov %s876_s23 }
 0x1cb   : > { %s1059_s22 = smov %s1062_s25  ;;  %s1060_s23 = smov %s1066_s26 }
 0x1cc   :  { %15 = sbr.rel (!%p13_p1) target bundleno = 4 (0x4), region = 166 }

</bundles_post_ra>
